<compile_context>
chip_gen: v5e
topology: v5e:2x2
jax: 0.10.0
libtpu: 0.0.40
codegen_flags: <defaults>
</compile_context>

<pallas_src>
import math

import jax
import jax.numpy as jnp
from jax.experimental import pallas as pl
from jax.experimental.pallas import tpu as pltpu

D_MODEL = 32          # must be even (same assumption as the torch reference)
MAX_LEN = 5000


# --------------------------- constant buffer (register_buffer) ---------------
def make_positional_encoding(d_model: int = D_MODEL, max_len: int = MAX_LEN):
    """pe[pos, 2i] = sin(pos * div), pe[pos, 2i+1] = cos(pos * div)."""
    position = jnp.arange(max_len, dtype=jnp.float32)[:, None]          # [L, 1]
    div_term = jnp.exp(jnp.arange(0, d_model, 2, dtype=jnp.float32)
                       * -(math.log(10000.0) / d_model))                # [D/2]
    ang = position * div_term                                           # [L, D/2]
    # Interleave sin/cos along the feature axis (even d_model assumed,
    # exactly like the torch reference).
    pe = jnp.stack([jnp.sin(ang), jnp.cos(ang)], axis=-1).reshape(max_len, d_model)
    return pe                                                            # [L, D]


# --------------------------------- kernel ------------------------------------
def _posenc_kernel(x_ref, pe_ref, o_ref):
    # x_ref: [B, S, D], pe_ref: [S, D] (already the pe[:S] window via BlockSpec).
    # Broadcast the table over the batch dim and add in one fused VPU pass.
    o_ref[...] = x_ref[...] + pe_ref[...][None, :, :]
    # TODO(synk): training-mode dropout (stateful PRNG mask) not implemented;
    # eval-mode dropout is the identity, matching the reference forward in eval.


def positional_encoding_forward(x, pe):
    """x: [B, S, D] float32, pe: [MAX_LEN, D] constant buffer -> [B, S, D]."""
    B, S, D = x.shape
    return pl.pallas_call(
        _posenc_kernel,
        out_shape=jax.ShapeDtypeStruct((B, S, D), x.dtype),
        grid=(1,),
        in_specs=[
            pl.BlockSpec((B, S, D), lambda i: (0, 0, 0)),
            # Only the first S rows of the [MAX_LEN, D] buffer are DMA'd:
            # this is the `pe[:, :x.size(1)]` slice, done by the BlockSpec.
            pl.BlockSpec((S, D), lambda i: (0, 0)),
        ],
        out_specs=pl.BlockSpec((B, S, D), lambda i: (0, 0, 0)),
        compiler_params=pltpu.CompilerParams(
            dimension_semantics=("arbitrary",)),
    )(x, pe)


# ---------------------------------- main --------------------------------------
if __name__ == "__main__":
    B, S, D = 2, 8, D_MODEL
    key = jax.random.PRNGKey(0)

    x = jax.random.normal(key, (B, S, D), dtype=jnp.float32)
    pe = make_positional_encoding(D, MAX_LEN)          # built once, like register_buffer

    out = positional_encoding_forward(x, pe)
    out = jax.block_until_ready(out)

    # Reference check (eval mode: dropout == identity).
    ref = x + pe[None, :S, :]
    assert out.shape == (B, S, D)
    assert jnp.all(jnp.isfinite(out))
    assert jnp.allclose(out, ref, atol=1e-6, rtol=1e-6)
    print("KERNEL_OK")
</pallas_src>

<mosaic_0001>
module attributes {stable_mosaic.version = 11 : i64} {
  func.func @_posenc_kernel(%arg0: i32, %arg1: memref<2x8x32xf32, #tpu.memory_space<vmem>>, %arg2: memref<8x32xf32, #tpu.memory_space<vmem>>, %arg3: memref<2x8x32xf32, #tpu.memory_space<vmem>>) attributes {dimension_semantics = [#tpu.dimension_semantics<arbitrary>], iteration_bounds = array<i64: 1>, scalar_prefetch = 0 : i64, scratch_operands = 0 : i64, tpu.core_type = #tpu.core_type<tc>, window_params = [{pipeline_mode = #tpu.pipeline_mode<synchronous>, transform_indices = @transform_0, window_bounds = array<i64: 2, 8, 32>}, {transform_indices = @transform_1, window_bounds = array<i64: 8, 32>}, {pipeline_mode = #tpu.pipeline_mode<synchronous>, transform_indices = @transform_2, window_bounds = array<i64: 2, 8, 32>}]} {
    %c0 = arith.constant 0 : index
    %c0_0 = arith.constant 0 : index
    %c0_1 = arith.constant 0 : index
    %0 = vector.load %arg1[%c0, %c0_0, %c0_1] : memref<2x8x32xf32, #tpu.memory_space<vmem>>, vector<2x8x32xf32>
    %c0_2 = arith.constant 0 : index
    %c0_3 = arith.constant 0 : index
    %1 = vector.load %arg2[%c0_2, %c0_3] : memref<8x32xf32, #tpu.memory_space<vmem>>, vector<8x32xf32>
    %2 = vector.shape_cast %1 : vector<8x32xf32> to vector<1x8x32xf32>
    %3 = vector.broadcast %2 : vector<1x8x32xf32> to vector<2x8x32xf32>
    %4 = arith.addf %0, %3 : vector<2x8x32xf32>
    %c0_4 = arith.constant 0 : index
    %c0_5 = arith.constant 0 : index
    %c0_6 = arith.constant 0 : index
    %5 = vector.load %arg3[%c0_4, %c0_5, %c0_6] : memref<2x8x32xf32, #tpu.memory_space<vmem>>, vector<2x8x32xf32>
    tpu.vector_store %arg3[%c0_4, %c0_5, %c0_6], %4 {strides = array<i32>} : memref<2x8x32xf32, #tpu.memory_space<vmem>>, vector<2x8x32xf32>,
    return
  }
  func.func @transform_0(%arg0: i32) -> (i32, i32, i32) {
    %c0_i32 = arith.constant 0 : i32
    %c0_i32_0 = arith.constant 0 : i32
    %c0_i32_1 = arith.constant 0 : i32
    %c0_i32_2 = arith.constant 0 : i32
    return %c0_i32, %c0_i32_0, %c0_i32_1 : i32, i32, i32
  }
  func.func @transform_1(%arg0: i32) -> (i32, i32) {
    %c0_i32 = arith.constant 0 : i32
    %c0_i32_0 = arith.constant 0 : i32
    %c0_i32_1 = arith.constant 0 : i32
    return %c0_i32, %c0_i32_0 : i32, i32
  }
  func.func @transform_2(%arg0: i32) -> (i32, i32, i32) {
    %c0_i32 = arith.constant 0 : i32
    %c0_i32_0 = arith.constant 0 : i32
    %c0_i32_1 = arith.constant 0 : i32
    %c0_i32_2 = arith.constant 0 : i32
    return %c0_i32, %c0_i32_0, %c0_i32_1 : i32, i32, i32
  }
}

</mosaic_0001>

<bundles_post_ra>
// kernel: tpu_custom_call.1
= control target key start
LH: loop header
LB: loop body
LE: loop exit
PB: predicated region body
PF: predicated region fallthrough
CT: control target
= control target key end

     0   :  { %vm17_vm0 = vcmask 261120   ;;  %s97_s0 = inlined_call_operand.vmem [shape: f32[2,8,32], index: 0, kind: input, shape index: {}]   ;;  %s98_s1 = inlined_call_operand.vmem [shape: f32[5000,32], index: 1, kind: input, shape index: {}]   ;;  %s99_s2 = inlined_call_operand.hbm [shape: f32[2,8,32], index: 2, kind: output, shape index: {}]  }
   0x1   :  { %v12_v0 = vld [vmem:[%s97_s0] sm:$0xff]  ;;  %v13_v2 = vld [vmem:[%s97_s0 + $0x8] sm:$0xff]  ;;  %s26_s17 = sshll.u32 %s99_s2, 4  ;;  %s27_s17 = int_to_ptr.hbm [resolvable:$true] %s26_s17 }
   0x2   :  { %v14_v1 = vld [vmem:[%s98_s1] sm:$0xff] }
   0x3   :  { %v15_v3 = vadd.f32 %v14_v1, %v12_v0  ;;  %v16_v4 = vadd.f32 %v14_v1, %v13_v2 }
   0x4   :  { %7 = vsyncpa [#allocation3], 0  ;;  %s67_s18 = smov [#allocation2]   ;;  %s68_s20 = smov 128  }
   0x5   :  { %s24_s19 = sshll.u32 %s67_s18, 4  ;;  %18 = vst.msk [vmem:[#allocation2] sm:$0xff] %vm17_vm0, %v15_v3  ;;  %s69_s1 = smov 8   ;;  %s25_s19 = int_to_ptr.vmem [resolvable:$true] %s24_s19 }
   0x6   :  { %19 = vst.msk [vmem:[#allocation2 + $0x8] sm:$0xff] %vm17_vm0, %v16_v4 }
   0x7   :  { %32 = dma.vmem_to_hbm [thread:$0]  %s25_s19, 256, %s27_s17, [#allocation3], %s68_s20, %s68_s20, %s69_s1  }
   0x8   :  { %65 = dma.done.wait [#allocation3], 256  }
   0x9   :  { %66 = vsyncadd [#allocation3], 4294967040 }
   0xa   :  { %37 = vsyncpa [#allocation3], 1 }

</bundles_post_ra>
